<compile_context>
chip_gen: v7x
topology: tpu7x:2x2x1
jax: 0.10.0
libtpu: 0.0.40
codegen_flags: <defaults>
</compile_context>

<pallas_src>
import math
from functools import partial

import numpy as np
import jax
import jax.numpy as jnp
from jax.experimental import pallas as pl
from jax.experimental.pallas import tpu as pltpu


# ---------------------------------------------------------------------------
# Host-side target assignment.
# TODO(synk): get_target / get_near_points is data-dependent scalar control
# flow over a variable number of ground-truth boxes (argmin tie-break, per-box
# branching); it is kept on host in NumPy rather than faked inside Pallas.
# ---------------------------------------------------------------------------
def _get_near_points(x, y, i, j):
    sub_x = x - i
    sub_y = y - j
    if sub_x > 0.5 and sub_y > 0.5:
        return [[0, 0], [1, 0], [0, 1]]
    elif sub_x < 0.5 and sub_y > 0.5:
        return [[0, 0], [-1, 0], [0, 1]]
    elif sub_x < 0.5 and sub_y < 0.5:
        return [[0, 0], [-1, 0], [0, -1]]
    else:
        return [[0, 0], [1, 0], [0, -1]]


def _get_target(l, targets, scaled_anchors, in_h, in_w, anchors_mask,
                num_classes, threshold=4):
    bs = len(targets)
    na = len(anchors_mask[l])
    bbox_attrs = 5 + num_classes
    anchors = np.asarray(scaled_anchors, dtype=np.float32)      # (9, 2)

    noobj_mask = np.ones((bs, na, in_h, in_w), dtype=np.float32)
    box_best_ratio = np.zeros((bs, na, in_h, in_w), dtype=np.float32)
    y_true = np.zeros((bs, na, in_h, in_w, bbox_attrs), dtype=np.float32)

    for b in range(bs):
        tgt = np.asarray(targets[b], dtype=np.float32)
        if tgt.shape[0] == 0:
            continue
        batch_target = np.zeros_like(tgt)
        batch_target[:, [0, 2]] = tgt[:, [0, 2]] * in_w
        batch_target[:, [1, 3]] = tgt[:, [1, 3]] * in_h
        batch_target[:, 4] = tgt[:, 4]

        ratios_of_gt_anchors = batch_target[:, None, 2:4] / anchors[None, :, :]
        ratios_of_anchors_gt = anchors[None, :, :] / batch_target[:, None, 2:4]
        ratios = np.concatenate([ratios_of_gt_anchors, ratios_of_anchors_gt], axis=-1)
        max_ratios = np.max(ratios, axis=-1)                     # (nt, 9)

        for t in range(max_ratios.shape[0]):
            ratio = max_ratios[t]
            over_threshold = ratio < threshold
            over_threshold[int(np.argmin(ratio))] = True
            for k, mask in enumerate(anchors_mask[l]):
                if not over_threshold[mask]:
                    continue
                i = int(math.floor(batch_target[t, 0]))
                j = int(math.floor(batch_target[t, 1]))
                offsets = _get_near_points(batch_target[t, 0], batch_target[t, 1], i, j)
                for offset in offsets:
                    local_i = i + offset[0]
                    local_j = j + offset[1]
                    if local_i >= in_w or local_i < 0 or local_j >= in_h or local_j < 0:
                        continue
                    if box_best_ratio[b, k, local_j, local_i] != 0:
                        if box_best_ratio[b, k, local_j, local_i] > ratio[mask]:
                            y_true[b, k, local_j, local_i, :] = 0
                        else:
                            continue
                    c = int(batch_target[t, 4])
                    noobj_mask[b, k, local_j, local_i] = 0
                    y_true[b, k, local_j, local_i, 0] = batch_target[t, 0]
                    y_true[b, k, local_j, local_i, 1] = batch_target[t, 1]
                    y_true[b, k, local_j, local_i, 2] = batch_target[t, 2]
                    y_true[b, k, local_j, local_i, 3] = batch_target[t, 3]
                    y_true[b, k, local_j, local_i, 4] = 1
                    y_true[b, k, local_j, local_i, c + 5] = 1
                    box_best_ratio[b, k, local_j, local_i] = ratio[mask]
    return y_true, noobj_mask


# ---------------------------------------------------------------------------
# Tiling choice: flatten H*W, pad to a multiple of 128 lanes, and tile the
# resulting sublane axis S.  TS == S (full) when small, otherwise TS = 32
# (multiple of 8) so one tile is ~C*32*128*4 bytes -> safe on every generation
# (well under v7x's 32 MiB scoped VMEM even for nc = 80).
# ---------------------------------------------------------------------------
def _choose_tiling(hw):
    s = -(-hw // 128)
    if s <= 32:
        return s, s                      # (padded-S, tile-S): single tile
    ts = 32
    s_pad = -(-s // ts) * ts
    return s_pad, ts


# ---------------------------------------------------------------------------
# Pallas kernel.
# Grid: (bs, na, S_pad // TS); block refs (channel-major, leading dims squeezed):
#   pred_ref, ytrue_ref : (C, TS, 128) f32
# Output:
#   o_ref : (1, 8, 128) f32 VMEM block per batch element; lanes 0..3 of row 0
#           hold [sum(1-giou) over pos, #pos, sum cls BCE over pos, sum conf BCE].
# Scratch:
#   acc_ref : SMEM (4,) f32 running sums (reset at the start of each batch's
#             reduction, flushed to o_ref on its last step).
# ---------------------------------------------------------------------------
def _yolo_loss_kernel(pred_ref, ytrue_ref, o_ref, acc_ref, *,
                      num_classes, label_smoothing, in_w, hw_valid, hw_pad,
                      ts, anchors_wh):
    a_idx = pl.program_id(1)
    j_idx = pl.program_id(2)

    @pl.when((a_idx == 0) & (j_idx == 0))
    def _init():
        for t in range(4):
            acc_ref[t] = jnp.float32(0.0)

    pred = pred_ref[...]          # (C, TS, 128)
    ytru = ytrue_ref[...]         # (C, TS, 128)

    # ---- geometry generated in-kernel (no geo planes shipped over HBM) ----
    row = jax.lax.broadcasted_iota(jnp.int32, (ts, 128), 0)
    lane = jax.lax.broadcasted_iota(jnp.int32, (ts, 128), 1)
    hw_idx = j_idx * (ts * 128) + row * 128 + lane            # flat index in padded H*W
    hw_f = hw_idx.astype(jnp.float32)
    w_f = jnp.float32(in_w)
    gy = jnp.floor((hw_f + 0.5) / w_f)                        # row index  (h)
    gx = hw_f - gy * w_f                                      # col index  (w)

    # anchor w/h for this anchor index (compile-time constants, scalar select)
    aw = jnp.float32(anchors_wh[0][0])
    ah = jnp.float32(anchors_wh[0][1])
    for k in range(1, len(anchors_wh)):
        aw = jnp.where(a_idx == k, jnp.float32(anchors_wh[k][0]), aw)
        ah = jnp.where(a_idx == k, jnp.float32(anchors_wh[k][1]), ah)

    # ---- box decode (sigmoid needed only for the 4 box channels) ----
    sig = jax.nn.sigmoid
    px = sig(pred[0])
    py = sig(pred[1])
    pw = sig(pred[2])
    ph = sig(pred[3])

    b1x = px * 2.0 - 0.5 + gx
    b1y = py * 2.0 - 0.5 + gy
    b1w = (pw * 2.0) ** 2 * aw
    b1h = (ph * 2.0) ** 2 * ah

    b2x = ytru[0]
    b2y = ytru[1]
    b2w = ytru[2]
    b2h = ytru[3]
    obj = ytru[4]
    mask = obj == 1.0
    zeros = jnp.zeros_like(obj)

    # ---- GIoU ----
    b1_min_x = b1x - b1w * 0.5
    b1_max_x = b1x + b1w * 0.5
    b1_min_y = b1y - b1h * 0.5
    b1_max_y = b1y + b1h * 0.5
    b2_min_x = b2x - b2w * 0.5
    b2_max_x = b2x + b2w * 0.5
    b2_min_y = b2y - b2h * 0.5
    b2_max_y = b2y + b2h * 0.5

    iw = jnp.maximum(jnp.minimum(b1_max_x, b2_max_x) - jnp.maximum(b1_min_x, b2_min_x), 0.0)
    ih = jnp.maximum(jnp.minimum(b1_max_y, b2_max_y) - jnp.maximum(b1_min_y, b2_min_y), 0.0)
    inter = iw * ih
    a1 = b1w * b1h
    a2 = b2w * b2h
    union = a1 + a2 - inter              # > 0 always (a1 > 0 by construction)
    iou = inter / union
    ew = jnp.maximum(jnp.maximum(b1_max_x, b2_max_x) - jnp.minimum(b1_min_x, b2_min_x), 0.0)
    eh = jnp.maximum(jnp.maximum(b1_max_y, b2_max_y) - jnp.minimum(b1_min_y, b2_min_y), 0.0)
    earea = ew * eh                      # >= a1 > 0 always
    giou = iou - (earea - union) / earea

    p_loc = jnp.sum(jnp.where(mask, 1.0 - giou, zeros))
    p_n = jnp.sum(obj)                   # obj is exactly 0/1

    # ---- BCE in logits form: max(x,0) - x*t + log(1 + exp(-|x|)) ----
    def bce_logits(x, t):
        return jnp.maximum(x, 0.0) - x * t + jnp.log(1.0 + jnp.exp(-jnp.abs(x)))

    # class loss: one slab op over all classes, mask broadcast over class axis
    cls_logits = pred[5:5 + num_classes]                     # (nc, TS, 128)
    tcls = ytru[5:5 + num_classes] * (1.0 - label_smoothing) + label_smoothing / num_classes
    cls_bce = bce_logits(cls_logits, tcls)
    p_cls = jnp.sum(jnp.where(mask[None, :, :], cls_bce, 0.0))

    # objectness loss over every (valid) cell
    tobj = jnp.where(mask, jnp.maximum(giou, 0.0), zeros)
    conf_bce = bce_logits(pred[4], tobj)
    if hw_pad != hw_valid:
        conf_bce = jnp.where(hw_idx < hw_valid, conf_bce, 0.0)   # mask padded tail
    p_conf = jnp.sum(conf_bce)

    # ---- accumulate ----
    acc_ref[0] = acc_ref[0] + p_loc
    acc_ref[1] = acc_ref[1] + p_n
    acc_ref[2] = acc_ref[2] + p_cls
    acc_ref[3] = acc_ref[3] + p_conf

    is_last = (a_idx == pl.num_programs(1) - 1) & (j_idx == pl.num_programs(2) - 1)

    @pl.when(is_last)
    def _store():
        lane8 = jax.lax.broadcasted_iota(jnp.int32, (8, 128), 1)
        vals = jnp.where(lane8 == 0, acc_ref[0], jnp.float32(0.0))
        vals = vals + jnp.where(lane8 == 1, acc_ref[1], jnp.float32(0.0))
        vals = vals + jnp.where(lane8 == 2, acc_ref[2], jnp.float32(0.0))
        vals = vals + jnp.where(lane8 == 3, acc_ref[3], jnp.float32(0.0))
        o_ref[0] = vals


def _run_kernel(pred5, ytrue5, *, num_classes, label_smoothing, in_w,
                hw_valid, hw_pad, ts, anchors_wh):
    bs, na, C, s_pad, _ = pred5.shape
    num_j = s_pad // ts
    kernel = partial(_yolo_loss_kernel,
                     num_classes=num_classes,
                     label_smoothing=float(label_smoothing),
                     in_w=float(in_w),
                     hw_valid=int(hw_valid),
                     hw_pad=int(hw_pad),
                     ts=int(ts),
                     anchors_wh=anchors_wh)
    blk = pl.BlockSpec((None, None, C, ts, 128), lambda b, a, j: (b, a, 0, j, 0))
    return pl.pallas_call(
        kernel,
        out_shape=jax.ShapeDtypeStruct((bs, 8, 128), jnp.float32),
        grid_spec=pltpu.PrefetchScalarGridSpec(
            num_scalar_prefetch=0,
            grid=(bs, na, num_j),
            in_specs=[blk, blk],
            out_specs=pl.BlockSpec((1, 8, 128), lambda b, a, j: (b, 0, 0)),
            scratch_shapes=[pltpu.SMEM((4,), jnp.float32)]),
        compiler_params=pltpu.CompilerParams(
            dimension_semantics=("parallel", "arbitrary", "arbitrary")),
    )(pred5, ytrue5)


# ---------------------------------------------------------------------------
# Full forward (mirrors YOLOLoss.forward).
# ---------------------------------------------------------------------------
def yolo_loss_forward(l, inp, targets, *, anchors, num_classes, input_shape,
                      anchors_mask, label_smoothing=0.0):
    bs, _, in_h, in_w = inp.shape
    na = len(anchors_mask[l])
    bbox_attrs = 5 + num_classes

    stride_h = input_shape[0] / in_h
    stride_w = input_shape[1] / in_w
    scaled_anchors = [(a_w / stride_w, a_h / stride_h) for a_w, a_h in anchors]

    # module constants
    balance = [0.4, 1.0, 4]
    box_ratio = 0.05
    obj_ratio = 1.0 * (input_shape[0] * input_shape[1]) / 640 ** 2
    cls_ratio = 0.5 * (num_classes / 80.0)

    hw = in_h * in_w
    s_pad, ts = _choose_tiling(hw)
    hw_pad = s_pad * 128

    # (bs, na*C, H, W) -> (bs, na, C, H*W): contiguous reshapes only, no transpose.
    pred = inp.reshape(bs, na, bbox_attrs, hw).astype(jnp.float32)
    if hw_pad != hw:
        pred = jnp.pad(pred, ((0, 0), (0, 0), (0, 0), (0, hw_pad - hw)))
    pred5 = pred.reshape(bs, na, bbox_attrs, s_pad, 128)

    # host-side target assignment -> channel-major layout
    y_true, _noobj = _get_target(l, targets, scaled_anchors, in_h, in_w,
                                 anchors_mask, num_classes)
    yt = np.moveaxis(y_true, -1, 2).reshape(bs, na, bbox_attrs, hw)
    if hw_pad != hw:
        yt = np.pad(yt, ((0, 0), (0, 0), (0, 0), (0, hw_pad - hw)))
    ytrue5 = jnp.asarray(yt.reshape(bs, na, bbox_attrs, s_pad, 128), dtype=jnp.float32)

    # per-layer anchor table, baked as compile-time constants
    anchors_wh = tuple(
        (float(scaled_anchors[m][0]), float(scaled_anchors[m][1]))
        for m in anchors_mask[l])

    partials = _run_kernel(pred5, ytrue5,
                           num_classes=num_classes,
                           label_smoothing=label_smoothing,
                           in_w=in_w, hw_valid=hw, hw_pad=hw_pad,
                           ts=ts, anchors_wh=anchors_wh)          # (bs, 8, 128)

    sums = jnp.sum(partials[:, 0, 0:4], axis=0)
    sum_loc, n_pos, sum_cls, sum_conf = sums[0], sums[1], sums[2], sums[3]

    n_total = float(bs * na * in_h * in_w)
    loss_conf = sum_conf / n_total
    n_safe = jnp.maximum(n_pos, 1.0)
    loss_pos = (sum_loc / n_safe) * box_ratio + \
               (sum_cls / (n_safe * num_classes)) * cls_ratio
    loss = jnp.where(n_pos > 0, loss_pos, 0.0) + loss_conf * balance[l] * obj_ratio
    return loss


# ---------------------------------------------------------------------------
# Pure-NumPy reference of the same forward (sanity check).
# ---------------------------------------------------------------------------
def _reference_loss(l, inp, targets, *, anchors, num_classes, input_shape,
                    anchors_mask, label_smoothing=0.0):
    inp = np.asarray(inp, dtype=np.float32)
    bs, _, in_h, in_w = inp.shape
    na = len(anchors_mask[l])
    bbox_attrs = 5 + num_classes
    stride_h = input_shape[0] / in_h
    stride_w = input_shape[1] / in_w
    scaled_anchors = [(a_w / stride_w, a_h / stride_h) for a_w, a_h in anchors]

    balance = [0.4, 1.0, 4]
    box_ratio = 0.05
    obj_ratio = 1.0 * (input_shape[0] * input_shape[1]) / 640 ** 2
    cls_ratio = 0.5 * (num_classes / 80.0)

    pred = np.transpose(inp.reshape(bs, na, bbox_attrs, in_h, in_w), (0, 1, 3, 4, 2))
    sig = lambda v: 1.0 / (1.0 + np.exp(-v))
    x = sig(pred[..., 0]); y = sig(pred[..., 1])
    w = sig(pred[..., 2]); h = sig(pred[..., 3])
    conf = sig(pred[..., 4]); pcls = sig(pred[..., 5:])

    y_true, _ = _get_target(l, targets, scaled_anchors, in_h, in_w,
                            anchors_mask, num_classes)

    sa_l = np.asarray(scaled_anchors, dtype=np.float32)[anchors_mask[l]]
    gx = np.broadcast_to(np.arange(in_w, dtype=np.float32), x.shape)
    gy = np.broadcast_to(np.arange(in_h, dtype=np.float32)[:, None], y.shape)
    aw = np.broadcast_to(sa_l[:, 0][None, :, None, None], w.shape)
    ah = np.broadcast_to(sa_l[:, 1][None, :, None, None], h.shape)
    bx = x * 2.0 - 0.5 + gx
    by = y * 2.0 - 0.5 + gy
    bw = (w * 2.0) ** 2 * aw
    bh = (h * 2.0) ** 2 * ah

    b2 = y_true[..., :4]
    b1_min = np.stack([bx - bw / 2, by - bh / 2], -1)
    b1_max = np.stack([bx + bw / 2, by + bh / 2], -1)
    b2_min = b2[..., :2] - b2[..., 2:4] / 2
    b2_max = b2[..., :2] + b2[..., 2:4] / 2
    iwh = np.maximum(np.minimum(b1_max, b2_max) - np.maximum(b1_min, b2_min), 0.0)
    inter = iwh[..., 0] * iwh[..., 1]
    union = bw * bh + b2[..., 2] * b2[..., 3] - inter
    iou = inter / union
    ewh = np.maximum(np.maximum(b1_max, b2_max) - np.minimum(b1_min, b2_min), 0.0)
    earea = ewh[..., 0] * ewh[..., 1]
    giou = iou - (earea - union) / earea

    mask = y_true[..., 4] == 1
    n = mask.sum()
    eps = 1e-7
    bce = lambda p, t: -t * np.log(np.clip(p, eps, 1 - eps)) - \
                       (1 - t) * np.log(1 - np.clip(p, eps, 1 - eps))
    loss = 0.0
    if n != 0:
        loss_loc = np.mean((1 - giou)[mask])
        tcls = y_true[..., 5:][mask] * (1 - label_smoothing) + label_smoothing / num_classes
        loss_cls = np.mean(bce(pcls[mask], tcls))
        loss += loss_loc * box_ratio + loss_cls * cls_ratio
        tobj = np.where(mask, np.maximum(giou, 0.0), 0.0)
    else:
        tobj = np.zeros_like(y_true[..., 4])
    loss_conf = np.mean(bce(conf, tobj))
    loss += loss_conf * balance[l] * obj_ratio
    return np.float32(loss)


if __name__ == "__main__":
    # small, deterministic configuration
    num_classes = 4
    anchors = [(4, 5), (6, 8), (10, 12), (14, 18), (20, 24), (28, 34),
               (40, 48), (60, 70), (90, 100)]            # in input-image pixels
    anchors_mask = [[6, 7, 8], [3, 4, 5], [0, 1, 2]]
    input_shape = (160, 160)
    l = 0
    bs, in_h, in_w = 2, 16, 16
    na = len(anchors_mask[l])
    bbox_attrs = 5 + num_classes                        # 9
    C_in = na * bbox_attrs                              # 27

    key = jax.random.PRNGKey(0)
    inp = jax.random.normal(key, (bs, C_in, in_h, in_w), dtype=jnp.float32)

    # deterministic ground-truth boxes: [cx, cy, w, h, class] normalized to [0,1]
    targets = [
        np.array([[0.40, 0.30, 0.30, 0.40, 1.0],
                  [0.70, 0.60, 0.50, 0.50, 3.0]], dtype=np.float32),
        np.array([[0.25, 0.75, 0.35, 0.30, 0.0]], dtype=np.float32),
    ]

    loss = yolo_loss_forward(
        l, inp, targets,
        anchors=anchors, num_classes=num_classes, input_shape=input_shape,
        anchors_mask=anchors_mask, label_smoothing=0.0)
    loss = jax.block_until_ready(loss)

    ref = _reference_loss(
        l, np.asarray(inp), targets,
        anchors=anchors, num_classes=num_classes, input_shape=input_shape,
        anchors_mask=anchors_mask, label_smoothing=0.0)

    np.testing.assert_allclose(np.asarray(loss), ref, rtol=2e-3, atol=1e-4)
    print("KERNEL_OK")
</pallas_src>

<mosaic_0001>
module attributes {stable_mosaic.version = 11 : i64} {
  func.func @_yolo_loss_kernel(%arg0: i32, %arg1: i32, %arg2: i32, %arg3: memref<1x1x9x2x128xf32, #tpu.memory_space<vmem>>, %arg4: memref<1x1x9x2x128xf32, #tpu.memory_space<vmem>>, %arg5: memref<1x8x128xf32, #tpu.memory_space<vmem>>, %arg6: memref<4xf32, #tpu.memory_space<smem>>) attributes {dimension_semantics = [#tpu.dimension_semantics<parallel>, #tpu.dimension_semantics<arbitrary>, #tpu.dimension_semantics<arbitrary>], iteration_bounds = array<i64: 2, 3, 1>, scalar_prefetch = 0 : i64, scratch_operands = 1 : i64, tpu.core_type = #tpu.core_type<tc>, window_params = [{transform_indices = @transform_0, window_bounds = array<i64: 1, 1, 9, 2, 128>}, {transform_indices = @transform_1, window_bounds = array<i64: 1, 1, 9, 2, 128>}, {transform_indices = @transform_2, window_bounds = array<i64: 1, 8, 128>}]} {
    %c0_i32 = arith.constant 0 : i32
    %0 = arith.cmpi eq, %arg1, %c0_i32 : i32
    %c0_i32_0 = arith.constant 0 : i32
    %1 = arith.cmpi eq, %arg2, %c0_i32_0 : i32
    %2 = arith.andi %0, %1 : i1
    %3 = arith.extui %2 : i1 to i32
    %c0_i32_1 = arith.constant 0 : i32
    %4 = arith.cmpi ne, %3, %c0_i32_1 : i32
    scf.if %4 {
      %cst_68 = arith.constant 0.000000e+00 : f32
      %c0_69 = arith.constant 0 : index
      %225 = memref.load %arg6[%c0_69] : memref<4xf32, #tpu.memory_space<smem>>
      memref.store %cst_68, %arg6[%c0_69] : memref<4xf32, #tpu.memory_space<smem>>
      %cst_70 = arith.constant 0.000000e+00 : f32
      %c1_71 = arith.constant 1 : index
      %226 = memref.load %arg6[%c1_71] : memref<4xf32, #tpu.memory_space<smem>>
      memref.store %cst_70, %arg6[%c1_71] : memref<4xf32, #tpu.memory_space<smem>>
      %cst_72 = arith.constant 0.000000e+00 : f32
      %c2_73 = arith.constant 2 : index
      %227 = memref.load %arg6[%c2_73] : memref<4xf32, #tpu.memory_space<smem>>
      memref.store %cst_72, %arg6[%c2_73] : memref<4xf32, #tpu.memory_space<smem>>
      %cst_74 = arith.constant 0.000000e+00 : f32
      %c3_75 = arith.constant 3 : index
      %228 = memref.load %arg6[%c3_75] : memref<4xf32, #tpu.memory_space<smem>>
      memref.store %cst_74, %arg6[%c3_75] : memref<4xf32, #tpu.memory_space<smem>>
    } else {
    }
    %c0 = arith.constant 0 : index
    %c0_2 = arith.constant 0 : index
    %c0_3 = arith.constant 0 : index
    %c0_4 = arith.constant 0 : index
    %c0_5 = arith.constant 0 : index
    %5 = vector.load %arg3[%c0, %c0_2, %c0_3, %c0_4, %c0_5] : memref<1x1x9x2x128xf32, #tpu.memory_space<vmem>>, vector<1x1x9x2x128xf32>
    %6 = vector.shape_cast %5 : vector<1x1x9x2x128xf32> to vector<9x2x128xf32>
    %c0_6 = arith.constant 0 : index
    %c0_7 = arith.constant 0 : index
    %c0_8 = arith.constant 0 : index
    %c0_9 = arith.constant 0 : index
    %c0_10 = arith.constant 0 : index
    %7 = vector.load %arg4[%c0_6, %c0_7, %c0_8, %c0_9, %c0_10] : memref<1x1x9x2x128xf32, #tpu.memory_space<vmem>>, vector<1x1x9x2x128xf32>
    %8 = vector.shape_cast %7 : vector<1x1x9x2x128xf32> to vector<9x2x128xf32>
    %9 = tpu.iota {dimensions = array<i32: 0>} : vector<2x128xi32>
    %10 = tpu.iota {dimensions = array<i32: 1>} : vector<2x128xi32>
    %c256_i32 = arith.constant 256 : i32
    %11 = arith.muli %arg2, %c256_i32 : i32
    %c128_i32 = arith.constant 128 : i32
    %12 = vector.broadcast %c128_i32 : i32 to vector<2x128xi32>
    %13 = arith.muli %9, %12 : vector<2x128xi32>
    %14 = vector.broadcast %11 : i32 to vector<2x128xi32>
    %15 = arith.addi %14, %13 : vector<2x128xi32>
    %16 = arith.addi %15, %10 : vector<2x128xi32>
    %17 = arith.sitofp %16 : vector<2x128xi32> to vector<2x128xf32>
    %cst = arith.constant 5.000000e-01 : f32
    %18 = vector.broadcast %cst : f32 to vector<2x128xf32>
    %19 = arith.addf %17, %18 : vector<2x128xf32>
    %cst_11 = arith.constant 1.600000e+01 : f32
    %20 = vector.broadcast %cst_11 : f32 to vector<2x128xf32>
    %21 = arith.divf %19, %20 : vector<2x128xf32>
    %22 = math.floor %21 : vector<2x128xf32>
    %cst_12 = arith.constant 1.600000e+01 : f32
    %23 = vector.broadcast %cst_12 : f32 to vector<2x128xf32>
    %24 = arith.mulf %22, %23 : vector<2x128xf32>
    %25 = arith.subf %17, %24 : vector<2x128xf32>
    %c1_i32 = arith.constant 1 : i32
    %26 = arith.cmpi eq, %arg1, %c1_i32 : i32
    %cst_13 = arith.constant 6.000000e+00 : f32
    %cst_14 = arith.constant 4.000000e+00 : f32
    %27 = arith.select %26, %cst_13, %cst_14 : f32
    %c1_i32_15 = arith.constant 1 : i32
    %28 = arith.cmpi eq, %arg1, %c1_i32_15 : i32
    %cst_16 = arith.constant 7.000000e+00 : f32
    %cst_17 = arith.constant 4.800000e+00 : f32
    %29 = arith.select %28, %cst_16, %cst_17 : f32
    %c2_i32 = arith.constant 2 : i32
    %30 = arith.cmpi eq, %arg1, %c2_i32 : i32
    %cst_18 = arith.constant 9.000000e+00 : f32
    %31 = arith.select %30, %cst_18, %27 : f32
    %c2_i32_19 = arith.constant 2 : i32
    %32 = arith.cmpi eq, %arg1, %c2_i32_19 : i32
    %cst_20 = arith.constant 1.000000e+01 : f32
    %33 = arith.select %32, %cst_20, %29 : f32
    %34 = vector.extract_strided_slice %6 {offsets = [0, 0, 0], sizes = [1, 2, 128], strides = [1, 1, 1]} : vector<9x2x128xf32> to vector<1x2x128xf32>
    %35 = vector.shape_cast %34 : vector<1x2x128xf32> to vector<2x128xf32>
    %36 = arith.negf %35 : vector<2x128xf32>
    %37 = math.exp %36 : vector<2x128xf32>
    %cst_21 = arith.constant 1.000000e+00 : f32
    %38 = vector.broadcast %cst_21 : f32 to vector<2x128xf32>
    %39 = arith.addf %38, %37 : vector<2x128xf32>
    %40 = arith.divf %38, %39 : vector<2x128xf32>
    %41 = vector.extract_strided_slice %6 {offsets = [1, 0, 0], sizes = [1, 2, 128], strides = [1, 1, 1]} : vector<9x2x128xf32> to vector<1x2x128xf32>
    %42 = vector.shape_cast %41 : vector<1x2x128xf32> to vector<2x128xf32>
    %43 = arith.negf %42 : vector<2x128xf32>
    %44 = math.exp %43 : vector<2x128xf32>
    %cst_22 = arith.constant 1.000000e+00 : f32
    %45 = vector.broadcast %cst_22 : f32 to vector<2x128xf32>
    %46 = arith.addf %45, %44 : vector<2x128xf32>
    %47 = arith.divf %45, %46 : vector<2x128xf32>
    %48 = vector.extract_strided_slice %6 {offsets = [2, 0, 0], sizes = [1, 2, 128], strides = [1, 1, 1]} : vector<9x2x128xf32> to vector<1x2x128xf32>
    %49 = vector.shape_cast %48 : vector<1x2x128xf32> to vector<2x128xf32>
    %50 = arith.negf %49 : vector<2x128xf32>
    %51 = math.exp %50 : vector<2x128xf32>
    %cst_23 = arith.constant 1.000000e+00 : f32
    %52 = vector.broadcast %cst_23 : f32 to vector<2x128xf32>
    %53 = arith.addf %52, %51 : vector<2x128xf32>
    %54 = arith.divf %52, %53 : vector<2x128xf32>
    %55 = vector.extract_strided_slice %6 {offsets = [3, 0, 0], sizes = [1, 2, 128], strides = [1, 1, 1]} : vector<9x2x128xf32> to vector<1x2x128xf32>
    %56 = vector.shape_cast %55 : vector<1x2x128xf32> to vector<2x128xf32>
    %57 = arith.negf %56 : vector<2x128xf32>
    %58 = math.exp %57 : vector<2x128xf32>
    %cst_24 = arith.constant 1.000000e+00 : f32
    %59 = vector.broadcast %cst_24 : f32 to vector<2x128xf32>
    %60 = arith.addf %59, %58 : vector<2x128xf32>
    %61 = arith.divf %59, %60 : vector<2x128xf32>
    %cst_25 = arith.constant 2.000000e+00 : f32
    %62 = vector.broadcast %cst_25 : f32 to vector<2x128xf32>
    %63 = arith.mulf %40, %62 : vector<2x128xf32>
    %cst_26 = arith.constant 5.000000e-01 : f32
    %64 = vector.broadcast %cst_26 : f32 to vector<2x128xf32>
    %65 = arith.subf %63, %64 : vector<2x128xf32>
    %66 = arith.addf %65, %25 : vector<2x128xf32>
    %cst_27 = arith.constant 2.000000e+00 : f32
    %67 = vector.broadcast %cst_27 : f32 to vector<2x128xf32>
    %68 = arith.mulf %47, %67 : vector<2x128xf32>
    %cst_28 = arith.constant 5.000000e-01 : f32
    %69 = vector.broadcast %cst_28 : f32 to vector<2x128xf32>
    %70 = arith.subf %68, %69 : vector<2x128xf32>
    %71 = arith.addf %70, %22 : vector<2x128xf32>
    %cst_29 = arith.constant 2.000000e+00 : f32
    %72 = vector.broadcast %cst_29 : f32 to vector<2x128xf32>
    %73 = arith.mulf %54, %72 : vector<2x128xf32>
    %74 = arith.mulf %73, %73 : vector<2x128xf32>
    %75 = vector.broadcast %31 : f32 to vector<2x128xf32>
    %76 = arith.mulf %74, %75 : vector<2x128xf32>
    %cst_30 = arith.constant 2.000000e+00 : f32
    %77 = vector.broadcast %cst_30 : f32 to vector<2x128xf32>
    %78 = arith.mulf %61, %77 : vector<2x128xf32>
    %79 = arith.mulf %78, %78 : vector<2x128xf32>
    %80 = vector.broadcast %33 : f32 to vector<2x128xf32>
    %81 = arith.mulf %79, %80 : vector<2x128xf32>
    %82 = vector.extract_strided_slice %8 {offsets = [0, 0, 0], sizes = [1, 2, 128], strides = [1, 1, 1]} : vector<9x2x128xf32> to vector<1x2x128xf32>
    %83 = vector.shape_cast %82 : vector<1x2x128xf32> to vector<2x128xf32>
    %84 = vector.extract_strided_slice %8 {offsets = [1, 0, 0], sizes = [1, 2, 128], strides = [1, 1, 1]} : vector<9x2x128xf32> to vector<1x2x128xf32>
    %85 = vector.shape_cast %84 : vector<1x2x128xf32> to vector<2x128xf32>
    %86 = vector.extract_strided_slice %8 {offsets = [2, 0, 0], sizes = [1, 2, 128], strides = [1, 1, 1]} : vector<9x2x128xf32> to vector<1x2x128xf32>
    %87 = vector.shape_cast %86 : vector<1x2x128xf32> to vector<2x128xf32>
    %88 = vector.extract_strided_slice %8 {offsets = [3, 0, 0], sizes = [1, 2, 128], strides = [1, 1, 1]} : vector<9x2x128xf32> to vector<1x2x128xf32>
    %89 = vector.shape_cast %88 : vector<1x2x128xf32> to vector<2x128xf32>
    %90 = vector.extract_strided_slice %8 {offsets = [4, 0, 0], sizes = [1, 2, 128], strides = [1, 1, 1]} : vector<9x2x128xf32> to vector<1x2x128xf32>
    %91 = vector.shape_cast %90 : vector<1x2x128xf32> to vector<2x128xf32>
    %cst_31 = arith.constant 1.000000e+00 : f32
    %92 = vector.broadcast %cst_31 : f32 to vector<2x128xf32>
    %93 = arith.cmpf oeq, %91, %92 : vector<2x128xf32>
    %cst_32 = arith.constant 0.000000e+00 : f32
    %94 = vector.broadcast %cst_32 : f32 to vector<2x128xf32>
    %cst_33 = arith.constant 5.000000e-01 : f32
    %95 = vector.broadcast %cst_33 : f32 to vector<2x128xf32>
    %96 = arith.mulf %76, %95 : vector<2x128xf32>
    %97 = arith.subf %66, %96 : vector<2x128xf32>
    %cst_34 = arith.constant 5.000000e-01 : f32
    %98 = vector.broadcast %cst_34 : f32 to vector<2x128xf32>
    %99 = arith.mulf %76, %98 : vector<2x128xf32>
    %100 = arith.addf %66, %99 : vector<2x128xf32>
    %cst_35 = arith.constant 5.000000e-01 : f32
    %101 = vector.broadcast %cst_35 : f32 to vector<2x128xf32>
    %102 = arith.mulf %81, %101 : vector<2x128xf32>
    %103 = arith.subf %71, %102 : vector<2x128xf32>
    %cst_36 = arith.constant 5.000000e-01 : f32
    %104 = vector.broadcast %cst_36 : f32 to vector<2x128xf32>
    %105 = arith.mulf %81, %104 : vector<2x128xf32>
    %106 = arith.addf %71, %105 : vector<2x128xf32>
    %cst_37 = arith.constant 5.000000e-01 : f32
    %107 = vector.broadcast %cst_37 : f32 to vector<2x128xf32>
    %108 = arith.mulf %87, %107 : vector<2x128xf32>
    %109 = arith.subf %83, %108 : vector<2x128xf32>
    %cst_38 = arith.constant 5.000000e-01 : f32
    %110 = vector.broadcast %cst_38 : f32 to vector<2x128xf32>
    %111 = arith.mulf %87, %110 : vector<2x128xf32>
    %112 = arith.addf %83, %111 : vector<2x128xf32>
    %cst_39 = arith.constant 5.000000e-01 : f32
    %113 = vector.broadcast %cst_39 : f32 to vector<2x128xf32>
    %114 = arith.mulf %89, %113 : vector<2x128xf32>
    %115 = arith.subf %85, %114 : vector<2x128xf32>
    %cst_40 = arith.constant 5.000000e-01 : f32
    %116 = vector.broadcast %cst_40 : f32 to vector<2x128xf32>
    %117 = arith.mulf %89, %116 : vector<2x128xf32>
    %118 = arith.addf %85, %117 : vector<2x128xf32>
    %119 = arith.minimumf %100, %112 : vector<2x128xf32>
    %120 = arith.maximumf %97, %109 : vector<2x128xf32>
    %121 = arith.subf %119, %120 : vector<2x128xf32>
    %cst_41 = arith.constant 0.000000e+00 : f32
    %122 = vector.broadcast %cst_41 : f32 to vector<2x128xf32>
    %123 = arith.maximumf %121, %122 : vector<2x128xf32>
    %124 = arith.minimumf %106, %118 : vector<2x128xf32>
    %125 = arith.maximumf %103, %115 : vector<2x128xf32>
    %126 = arith.subf %124, %125 : vector<2x128xf32>
    %cst_42 = arith.constant 0.000000e+00 : f32
    %127 = vector.broadcast %cst_42 : f32 to vector<2x128xf32>
    %128 = arith.maximumf %126, %127 : vector<2x128xf32>
    %129 = arith.mulf %123, %128 : vector<2x128xf32>
    %130 = arith.mulf %76, %81 : vector<2x128xf32>
    %131 = arith.mulf %87, %89 : vector<2x128xf32>
    %132 = arith.addf %130, %131 : vector<2x128xf32>
    %133 = arith.subf %132, %129 : vector<2x128xf32>
    %134 = arith.divf %129, %133 : vector<2x128xf32>
    %135 = arith.maximumf %100, %112 : vector<2x128xf32>
    %136 = arith.minimumf %97, %109 : vector<2x128xf32>
    %137 = arith.subf %135, %136 : vector<2x128xf32>
    %cst_43 = arith.constant 0.000000e+00 : f32
    %138 = vector.broadcast %cst_43 : f32 to vector<2x128xf32>
    %139 = arith.maximumf %137, %138 : vector<2x128xf32>
    %140 = arith.maximumf %106, %118 : vector<2x128xf32>
    %141 = arith.minimumf %103, %115 : vector<2x128xf32>
    %142 = arith.subf %140, %141 : vector<2x128xf32>
    %cst_44 = arith.constant 0.000000e+00 : f32
    %143 = vector.broadcast %cst_44 : f32 to vector<2x128xf32>
    %144 = arith.maximumf %142, %143 : vector<2x128xf32>
    %145 = arith.mulf %139, %144 : vector<2x128xf32>
    %146 = arith.subf %145, %133 : vector<2x128xf32>
    %147 = arith.divf %146, %145 : vector<2x128xf32>
    %148 = arith.subf %134, %147 : vector<2x128xf32>
    %cst_45 = arith.constant 1.000000e+00 : f32
    %149 = vector.broadcast %cst_45 : f32 to vector<2x128xf32>
    %150 = arith.subf %149, %148 : vector<2x128xf32>
    %151 = arith.select %93, %150, %94 : vector<2x128xi1>, vector<2x128xf32>
    %152 = vector.shape_cast %151 : vector<2x128xf32> to vector<1x2x128xf32>
    %cst_46 = arith.constant dense<0.000000e+00> : vector<1xf32>
    %153 = vector.multi_reduction <add>, %152, %cst_46 [1, 2] : vector<1x2x128xf32> to vector<1xf32>
    %154 = vector.shape_cast %153 : vector<1xf32> to vector<1x1x1xf32>
    %155 = vector.extract %154[0, 0, 0] : f32 from vector<1x1x1xf32>
    %156 = vector.shape_cast %91 : vector<2x128xf32> to vector<1x2x128xf32>
    %cst_47 = arith.constant dense<0.000000e+00> : vector<1xf32>
    %157 = vector.multi_reduction <add>, %156, %cst_47 [1, 2] : vector<1x2x128xf32> to vector<1xf32>
    %158 = vector.shape_cast %157 : vector<1xf32> to vector<1x1x1xf32>
    %159 = vector.extract %158[0, 0, 0] : f32 from vector<1x1x1xf32>
    %160 = vector.extract_strided_slice %6 {offsets = [5, 0, 0], sizes = [4, 2, 128], strides = [1, 1, 1]} : vector<9x2x128xf32> to vector<4x2x128xf32>
    %161 = vector.extract_strided_slice %8 {offsets = [5, 0, 0], sizes = [4, 2, 128], strides = [1, 1, 1]} : vector<9x2x128xf32> to vector<4x2x128xf32>
    %cst_48 = arith.constant 1.000000e+00 : f32
    %162 = vector.broadcast %cst_48 : f32 to vector<4x2x128xf32>
    %163 = arith.mulf %161, %162 : vector<4x2x128xf32>
    %cst_49 = arith.constant 0.000000e+00 : f32
    %164 = vector.broadcast %cst_49 : f32 to vector<4x2x128xf32>
    %165 = arith.addf %163, %164 : vector<4x2x128xf32>
    %cst_50 = arith.constant 0.000000e+00 : f32
    %166 = vector.broadcast %cst_50 : f32 to vector<4x2x128xf32>
    %167 = arith.maximumf %160, %166 : vector<4x2x128xf32>
    %168 = arith.mulf %160, %165 : vector<4x2x128xf32>
    %169 = arith.subf %167, %168 : vector<4x2x128xf32>
    %170 = math.absf %160 : vector<4x2x128xf32>
    %cst_51 = arith.constant 0.000000e+00 : f32
    %171 = vector.broadcast %cst_51 : f32 to vector<4x2x128xf32>
    %172 = arith.subf %171, %170 : vector<4x2x128xf32>
    %173 = math.exp %172 : vector<4x2x128xf32>
    %cst_52 = arith.constant 1.000000e+00 : f32
    %174 = vector.broadcast %cst_52 : f32 to vector<4x2x128xf32>
    %175 = arith.addf %174, %173 : vector<4x2x128xf32>
    %176 = math.log %175 : vector<4x2x128xf32>
    %177 = arith.addf %169, %176 : vector<4x2x128xf32>
    %178 = vector.shape_cast %93 : vector<2x128xi1> to vector<1x2x128xi1>
    %cst_53 = arith.constant 0.000000e+00 : f32
    %179 = vector.shape_cast %178 : vector<1x2x128xi1> to vector<1x2x128xi1>
    %180 = vector.broadcast %179 : vector<1x2x128xi1> to vector<4x2x128xi1>
    %181 = vector.broadcast %cst_53 : f32 to vector<4x2x128xf32>
    %182 = arith.select %180, %177, %181 : vector<4x2x128xi1>, vector<4x2x128xf32>
    %183 = vector.shape_cast %182 : vector<4x2x128xf32> to vector<1x4x2x128xf32>
    %cst_54 = arith.constant dense<0.000000e+00> : vector<1xf32>
    %184 = vector.multi_reduction <add>, %183, %cst_54 [1, 2, 3] : vector<1x4x2x128xf32> to vector<1xf32>
    %185 = vector.shape_cast %184 : vector<1xf32> to vector<1x1x1x1xf32>
    %186 = vector.extract %185[0, 0, 0, 0] : f32 from vector<1x1x1x1xf32>
    %cst_55 = arith.constant 0.000000e+00 : f32
    %187 = vector.broadcast %cst_55 : f32 to vector<2x128xf32>
    %188 = arith.maximumf %148, %187 : vector<2x128xf32>
    %189 = arith.select %93, %188, %94 : vector<2x128xi1>, vector<2x128xf32>
    %190 = vector.extract_strided_slice %6 {offsets = [4, 0, 0], sizes = [1, 2, 128], strides = [1, 1, 1]} : vector<9x2x128xf32> to vector<1x2x128xf32>
    %191 = vector.shape_cast %190 : vector<1x2x128xf32> to vector<2x128xf32>
    %cst_56 = arith.constant 0.000000e+00 : f32
    %192 = vector.broadcast %cst_56 : f32 to vector<2x128xf32>
    %193 = arith.maximumf %191, %192 : vector<2x128xf32>
    %194 = arith.mulf %191, %189 : vector<2x128xf32>
    %195 = arith.subf %193, %194 : vector<2x128xf32>
    %196 = math.absf %191 : vector<2x128xf32>
    %cst_57 = arith.constant 0.000000e+00 : f32
    %197 = vector.broadcast %cst_57 : f32 to vector<2x128xf32>
    %198 = arith.subf %197, %196 : vector<2x128xf32>
    %199 = math.exp %198 : vector<2x128xf32>
    %cst_58 = arith.constant 1.000000e+00 : f32
    %200 = vector.broadcast %cst_58 : f32 to vector<2x128xf32>
    %201 = arith.addf %200, %199 : vector<2x128xf32>
    %202 = math.log %201 : vector<2x128xf32>
    %203 = arith.addf %195, %202 : vector<2x128xf32>
    %204 = vector.shape_cast %203 : vector<2x128xf32> to vector<1x2x128xf32>
    %cst_59 = arith.constant dense<0.000000e+00> : vector<1xf32>
    %205 = vector.multi_reduction <add>, %204, %cst_59 [1, 2] : vector<1x2x128xf32> to vector<1xf32>
    %206 = vector.shape_cast %205 : vector<1xf32> to vector<1x1x1xf32>
    %207 = vector.extract %206[0, 0, 0] : f32 from vector<1x1x1xf32>
    %c0_60 = arith.constant 0 : index
    %208 = memref.load %arg6[%c0_60] : memref<4xf32, #tpu.memory_space<smem>>
    %209 = arith.addf %208, %155 : f32
    %c0_61 = arith.constant 0 : index
    %210 = memref.load %arg6[%c0_61] : memref<4xf32, #tpu.memory_space<smem>>
    memref.store %209, %arg6[%c0_61] : memref<4xf32, #tpu.memory_space<smem>>
    %c1 = arith.constant 1 : index
    %211 = memref.load %arg6[%c1] : memref<4xf32, #tpu.memory_space<smem>>
    %212 = arith.addf %211, %159 : f32
    %c1_62 = arith.constant 1 : index
    %213 = memref.load %arg6[%c1_62] : memref<4xf32, #tpu.memory_space<smem>>
    memref.store %212, %arg6[%c1_62] : memref<4xf32, #tpu.memory_space<smem>>
    %c2 = arith.constant 2 : index
    %214 = memref.load %arg6[%c2] : memref<4xf32, #tpu.memory_space<smem>>
    %215 = arith.addf %214, %186 : f32
    %c2_63 = arith.constant 2 : index
    %216 = memref.load %arg6[%c2_63] : memref<4xf32, #tpu.memory_space<smem>>
    memref.store %215, %arg6[%c2_63] : memref<4xf32, #tpu.memory_space<smem>>
    %c3 = arith.constant 3 : index
    %217 = memref.load %arg6[%c3] : memref<4xf32, #tpu.memory_space<smem>>
    %218 = arith.addf %217, %207 : f32
    %c3_64 = arith.constant 3 : index
    %219 = memref.load %arg6[%c3_64] : memref<4xf32, #tpu.memory_space<smem>>
    memref.store %218, %arg6[%c3_64] : memref<4xf32, #tpu.memory_space<smem>>
    %c2_i32_65 = arith.constant 2 : i32
    %220 = arith.cmpi eq, %arg1, %c2_i32_65 : i32
    %c0_i32_66 = arith.constant 0 : i32
    %221 = arith.cmpi eq, %arg2, %c0_i32_66 : i32
    %222 = arith.andi %220, %221 : i1
    %223 = arith.extui %222 : i1 to i32
    %c0_i32_67 = arith.constant 0 : i32
    %224 = arith.cmpi ne, %223, %c0_i32_67 : i32
    scf.if %224 {
      %225 = tpu.iota {dimensions = array<i32: 1>} : vector<8x128xi32>
      %c0_i32_68 = arith.constant 0 : i32
      %226 = vector.broadcast %c0_i32_68 : i32 to vector<8x128xi32>
      %227 = arith.cmpi eq, %225, %226 : vector<8x128xi32>
      %c0_69 = arith.constant 0 : index
      %228 = memref.load %arg6[%c0_69] : memref<4xf32, #tpu.memory_space<smem>>
      %cst_70 = arith.constant 0.000000e+00 : f32
      %229 = vector.broadcast %228 : f32 to vector<8x128xf32>
      %230 = vector.broadcast %cst_70 : f32 to vector<8x128xf32>
      %231 = arith.select %227, %229, %230 : vector<8x128xi1>, vector<8x128xf32>
      %c1_i32_71 = arith.constant 1 : i32
      %232 = vector.broadcast %c1_i32_71 : i32 to vector<8x128xi32>
      %233 = arith.cmpi eq, %225, %232 : vector<8x128xi32>
      %c1_72 = arith.constant 1 : index
      %234 = memref.load %arg6[%c1_72] : memref<4xf32, #tpu.memory_space<smem>>
      %cst_73 = arith.constant 0.000000e+00 : f32
      %235 = vector.broadcast %234 : f32 to vector<8x128xf32>
      %236 = vector.broadcast %cst_73 : f32 to vector<8x128xf32>
      %237 = arith.select %233, %235, %236 : vector<8x128xi1>, vector<8x128xf32>
      %238 = arith.addf %231, %237 : vector<8x128xf32>
      %c2_i32_74 = arith.constant 2 : i32
      %239 = vector.broadcast %c2_i32_74 : i32 to vector<8x128xi32>
      %240 = arith.cmpi eq, %225, %239 : vector<8x128xi32>
      %c2_75 = arith.constant 2 : index
      %241 = memref.load %arg6[%c2_75] : memref<4xf32, #tpu.memory_space<smem>>
      %cst_76 = arith.constant 0.000000e+00 : f32
      %242 = vector.broadcast %241 : f32 to vector<8x128xf32>
      %243 = vector.broadcast %cst_76 : f32 to vector<8x128xf32>
      %244 = arith.select %240, %242, %243 : vector<8x128xi1>, vector<8x128xf32>
      %245 = arith.addf %238, %244 : vector<8x128xf32>
      %c3_i32 = arith.constant 3 : i32
      %246 = vector.broadcast %c3_i32 : i32 to vector<8x128xi32>
      %247 = arith.cmpi eq, %225, %246 : vector<8x128xi32>
      %c3_77 = arith.constant 3 : index
      %248 = memref.load %arg6[%c3_77] : memref<4xf32, #tpu.memory_space<smem>>
      %cst_78 = arith.constant 0.000000e+00 : f32
      %249 = vector.broadcast %248 : f32 to vector<8x128xf32>
      %250 = vector.broadcast %cst_78 : f32 to vector<8x128xf32>
      %251 = arith.select %247, %249, %250 : vector<8x128xi1>, vector<8x128xf32>
      %252 = arith.addf %245, %251 : vector<8x128xf32>
      %c0_79 = arith.constant 0 : index
      %c0_80 = arith.constant 0 : index
      %c0_81 = arith.constant 0 : index
      %253 = vector.load %arg5[%c0_79, %c0_80, %c0_81] : memref<1x8x128xf32, #tpu.memory_space<vmem>>, vector<1x8x128xf32>
      %254 = vector.shape_cast %253 : vector<1x8x128xf32> to vector<8x128xf32>
      %255 = vector.shape_cast %252 : vector<8x128xf32> to vector<1x8x128xf32>
      tpu.vector_store %arg5[%c0_79, %c0_80, %c0_81], %255 {strides = array<i32>} : memref<1x8x128xf32, #tpu.memory_space<vmem>>, vector<1x8x128xf32>,
    } else {
    }
    return
  }
  func.func @transform_0(%arg0: i32, %arg1: i32, %arg2: i32) -> (i32, i32, i32, i32, i32) {
    %c0_i32 = arith.constant 0 : i32
    %c0_i32_0 = arith.constant 0 : i32
    %c0_i32_1 = arith.constant 0 : i32
    return %arg0, %arg1, %c0_i32, %arg2, %c0_i32_0 : i32, i32, i32, i32, i32
  }
  func.func @transform_1(%arg0: i32, %arg1: i32, %arg2: i32) -> (i32, i32, i32, i32, i32) {
    %c0_i32 = arith.constant 0 : i32
    %c0_i32_0 = arith.constant 0 : i32
    %c0_i32_1 = arith.constant 0 : i32
    return %arg0, %arg1, %c0_i32, %arg2, %c0_i32_0 : i32, i32, i32, i32, i32
  }
  func.func @transform_2(%arg0: i32, %arg1: i32, %arg2: i32) -> (i32, i32, i32) {
    %c0_i32 = arith.constant 0 : i32
    %c0_i32_0 = arith.constant 0 : i32
    %c0_i32_1 = arith.constant 0 : i32
    return %arg0, %c0_i32, %c0_i32_0 : i32, i32, i32
  }
}

</mosaic_0001>

<bundles_post_ra>
// kernel: tpu_custom_call.1
= control target key start
LH: loop header
LB: loop body
LE: loop exit
PB: predicated region body
PF: predicated region fallthrough
CT: control target
= control target key end

     0   :  { %s1451_s0 = inlined_call_operand.hbm [shape: f32[2,3,9,2,128], index: 0, kind: input, shape index: {}]   ;;  %s1452_s1 = inlined_call_operand.hbm [shape: f32[2,3,9,2,128], index: 1, kind: input, shape index: {}]   ;;  %s1453_s2 = inlined_call_operand.hbm [shape: f32[2,8,128], index: 2, kind: output, shape index: {}]  }
   0x1   :  { %1463 = sst [smem:[#allocation16_spill]] %s1451_s0 }
   0x2   :  { %1464 = sst [smem:[#allocation17_spill]] %s1452_s1 }
   0x3   :  { %7 = vsyncpa [#allocation4], 0 }
   0x4   :  { %9 = vsyncpa [#allocation4 + $0x1], 0 }
   0x5   :  { %10 = vsyncpa [#allocation7], 0 }
   0x6   :  { %12 = vsyncpa [#allocation7 + $0x1], 0 }
   0x7   :  { %13 = vsyncpa [#allocation5], 0 }
   0x8   :  { %15 = vsyncpa [#allocation5 + $0x1], 0  ;;  %s1059_s9 = smov 0   ;;  %s1061_s10 = smov 0  }
   0x9   :  { %s1063_s11 = smov 0   ;;  %s1065_s12 = smov 0  }
   0xa   :  { %s1067_s13 = smov 0   ;;  %s1069_s14 = smov 0  }
   0xb   :  { %s1071_s15 = smov 0   ;;  %s1073_s16 = smov 0  }
   0xc   :  { %s1075_s17 = smov 0   ;;  %s1077_s18 = smov 0  }
   0xd   :  { %s1079_s19 = smov 0  }
   0xe LB: > { %1465 = sst [smem:[#allocation12_spill]] %s1028_s17  ;;  %s653_s20 = sadd.s32 4294967295, %s1036_s19   ;;  %s1036_s19 = sphi %s1079_s19, %s21_s19   ;;  %s1032_s18 = sphi %s1077_s18, %s1486_s18   ;;  %s1028_s17 = sphi %s1075_s17, %s1485_s17   ;;  %s1024_s16 = sphi %s1073_s16, %s1484_s16   ;;  %s1020_s15 = sphi %s1071_s15, %s1483_s15   ;;  %s1016_s14 = sphi %s1069_s14, %s1492_s14   ;;  %s1012_s13 = sphi %s1067_s13, %s1491_s13   ;;  %s1008_s12 = sphi %s1065_s12, %s1490_s12   ;;  %s1004_s11 = sphi %s1063_s11, %s1489_s11   ;;  %s1000_s10 = sphi %s1061_s10, %s1488_s10   ;;  %s996_s9 = sphi %s1059_s9, %s1487_s9  }
   0xf   : > { %1466 = sst [smem:[#allocation13_spill]] %s1032_s18  ;;  %s654_s21 = sadd.s32 4294967294, %s1036_s19  }
  0x10   : > { %s36_s22 = sadd.s32 1, %s1028_s17  ;;  %s40_s23 = sadd.s32 1, %s1032_s18 }
  0x11   : > { %p38_p0 = scmp.ge.s32.totalorder %s36_s22, 3  ;;  %s51_s24 = sadd.s32 1, %s1016_s14 }
  0x12   : > { %p58_p1 = scmp.ne.s32.totalorder %s1016_s14, %s1012_s13  ;;  %p59_p2 = scmp.eq.s32.totalorder %s1036_s19, 0 }
  0x13   : > { %s1494_s22 = smov (%p38_p0, %s36_s22), 0  ;;  %s1496_s23 = smov (!%p38_p0, %s40_s23), %s1032_s18 }
  0x14   : > { %1467 = sst [smem:[#allocation14_spill]] %s1494_s22  ;;  %s45_s25 = ssub.s32 %s1028_s17, %s1494_s22 }
  0x15   : > { %p1125_p3 = por %p59_p2, %p58_p1  ;;  %p42_p4 = scmp.ge.s32.totalorder %s1496_s23, 2 }
  0x16   : > { %p64_p5 = scmp.ne.s32.totalorder %s1012_s13, %s1008_s12  ;;  %p65_p6 = scmp.eq.s32.totalorder %s653_s20, 0 }
  0x17   : > { %s107_s27 = sadd.s32 1, %s1004_s11  ;;  %s1498_s23 = smov (%p42_p4, %s1496_s23), 0 }
  0x18   : > { %1469 = sst [smem:[#allocation15_spill]] %s1498_s23  ;;  %p1133_p7 = por %p65_p6, %p64_p5 }
  0x19   : > { %p117_p8 = scmp.ne.s32.totalorder %s1004_s11, %s1000_s10  ;;  %s44_s29 = ssub.s32 %s1032_s18, %s1498_s23 }
  0x1a   : > { %s1470_s28 = scalar_select %p1133_p7, 1, 0 }
  0x1b   : > { %p118_p9 = scmp.eq.s32.totalorder %s653_s20, 5  ;;  %s46_s30 = sor.u32 %s45_s25, %s44_s29 }
  0x1c   : > { %p105_p10 = scmp.eq.s32.totalorder %s44_s29, 0  ;;  %p49_p11 = scmp.eq.s32.totalorder %s46_s30, 0 }
  0x1d   : > { %p1141_p12 = por %p118_p9, %p117_p8  ;;  %p123_p13 = scmp.ne.s32.totalorder %s1000_s10, %s996_s9 }
  0x1e   : > { %s1146_s4 = scalar_select %p105_p10, %s1004_s11, %s107_s27  }
  0x1f   : > { %s1471_s3 = scalar_select %p1141_p12, 1, 0 }
  0x20   : > { %s1149_s5 = scalar_select %p49_p11, %s1016_s14, %s51_s24  }
  0x21   : > { %p124_p0 = scmp.eq.s32.totalorder %s654_s21, 5  ;;  %p717_p1 = scmp.lt.s32.totalorder %s1036_s19, 6 }
  0x22   : > { %s1159_s7 = sand.u32 1, %s1016_s14   ;;  %s682_s12 = smul.u32 9, %s1028_s17 }
  0x23   : > { %p1154_p2 = por %p124_p0, %p123_p13  ;;  %s1456_s8 = smul.u32 18, %s1159_s7 }
  0x24   : > { %p1165_p4 = pnand %p717_p1, %p1125_p3  ;;  %s683_s21 = smul.u32 27, %s1032_s18 }
  0x25   : > { %s1472_s6 = scalar_select %p1154_p2, 1, 0 }
  0x26   : > { %s148_s24 = scalar_lea.vmem [#allocation3], %s1456_s8  ;;  %s1172_s27 = sadd.s32 %s683_s21, %s682_s12 }
  0x27   : > { %s158_s25 = sshll.u32 %s148_s24, 4  ;;  %s1457_s29 = sshll.u32 %s1172_s27, 5  ;;  %s1174_s25 = int_to_ptr.vmem [resolvable:$true] %s158_s25 }
  0x28   : > { %s1474_s0 = sld [smem:[#allocation16_spill]]  ;;  %s145_s22 = scalar_lea.sflag [#allocation4], %s1159_s7 }
  0x29   : > { %p852_p5 = pneg %p1165_p4 }
  0x2e   : > { %s1182_s23 = scalar_lea.hbm %s1474_s0, %s1457_s29  ;;  %s855_s24 = scalar_lea.hbm %s1474_s0, 1728 }
  0x2f   : > { %s850_s8 = scalar_lea.hbm %s1182_s23, 288  ;;  %p856_p9 = scmp.lt.u32.totalorder %s1182_s23, %s1474_s0 }
  0x30   : > { %p851_p3 = scmp.ne.s32.totalorder %s1182_s23, %s850_s8  ;;  %p857_p10 = scmp.lt.u32.totalorder %s855_s24, %s850_s8 }
  0x31   : > { %p859_p13 = scmp.lt.u32.totalorder %s850_s8, %s1182_s23 }
  0x32   : > { %p853_p6 = pnand %p852_p5, %p851_p3  ;;  %p858_p11 = por %p857_p10, %p856_p9 }
  0x34   : > { %p854_p8 = pneg %p853_p6  ;;  %p860_p0 = por %p859_p13, %p858_p11 }
  0x36   : > { %p861_p1 = pnand %p860_p0, %p854_p8 }
  0x38   : > { %864 = shalt.err (!%p861_p1)
}
  0x39   : > { %s865_s29 = scalar_lea.vmem %s1174_s25, 288  ;;  %s1038_s12 = smov [#allocation3]  }
  0x3a   : > { %p866_p3 = scmp.ne.s32.totalorder %s1174_s25, %s865_s29  ;;  %s870_s21 = sshll.u32 %s1038_s12, 4  ;;  %s871_s21 = int_to_ptr.vmem [resolvable:$false] %s870_s21 }
  0x3b   : > { %s872_s30 = scalar_lea.vmem %s871_s21, 576  ;;  %p873_p12 = scmp.lt.s32.totalorder %s1174_s25, %s871_s21 }
  0x3c   : > { %p868_p6 = pnand %p866_p3, %p852_p5  ;;  %p874_p9 = scmp.lt.s32.totalorder %s872_s30, %s865_s29 }
  0x3e   : > { %p869_p2 = pneg %p868_p6  ;;  %p875_p10 = por %p874_p9, %p873_p12 }
  0x40   : > { %p876_p11 = pnand %p875_p10, %p869_p2 }
  0x42   : > { %879 = shalt.err (!%p876_p11)
}
  0x43   : > { %s1039_s8 = smov 32   ;;  %s1040_s24 = smov 2  }
  0x44   : > { %709 = dma.hbm_to_vmem [thread:$0]  (!%p1165_p4), %s1182_s23, 288, %s1174_s25, %s145_s22, %s1039_s8, %s1039_s8, %s1040_s24  }
  0x45   : > { %p659_p12 = scmp.ge.s32.totalorder %s1036_s19, 1  ;;  %p190_p2 = scmp.lt.s32.totalorder %s1036_s19, 7 }
  0x46   : > { %s1476_s26 = sshll.u32 %s1172_s27, 5  ;;  %s1477_s1 = sld [smem:[#allocation17_spill]] }
  0x47   : > { %p1217_p8 = pnand %p659_p12, %p190_p2  ;;  %s1478_s0 = smul.u32 18, %s1159_s7 }
  0x48   : > { %s169_s22 = scalar_lea.sflag [#allocation7], %s1159_s7 }
  0x49   : > { %s172_s18 = scalar_lea.vmem [#allocation6], %s1478_s0 }
  0x4a   : > { %s182_s17 = sshll.u32 %s172_s18, 4  ;;  %s1230_s17 = int_to_ptr.vmem [resolvable:$true] %s182_s17 }
  0x4c   : > { %s1226_s30 = scalar_lea.hbm %s1477_s1, %s1476_s26  ;;  %s885_s26 = scalar_lea.hbm %s1477_s1, 1728 }
  0x4d   : > { %s880_s23 = scalar_lea.hbm %s1226_s30, 288  ;;  %p886_p3 = scmp.lt.u32.totalorder %s1226_s30, %s1477_s1 }
  0x4e   : > { %p881_p13 = scmp.ne.s32.totalorder %s1226_s30, %s880_s23  ;;  %p887_p6 = scmp.lt.u32.totalorder %s885_s26, %s880_s23 }
  0x4f   : > { %p889_p10 = scmp.lt.u32.totalorder %s880_s23, %s1226_s30 }
  0x50   : > { %p883_p0 = pnand %p881_p13, %p852_p5  ;;  %p888_p9 = por %p887_p6, %p886_p3 }
  0x52   : > { %p884_p1 = pneg %p883_p0  ;;  %p890_p11 = por %p889_p10, %p888_p9 }
  0x54   : > { %p891_p12 = pnand %p890_p11, %p884_p1 }
  0x56   : > { %894 = shalt.err (!%p891_p12)
}
  0x57   : > { %s895_s0 = scalar_lea.vmem %s1230_s17, 288  ;;  %s1041_s18 = smov [#allocation6]  }
  0x58   : > { %p896_p2 = scmp.ne.s32.totalorder %s1230_s17, %s895_s0  ;;  %s900_s25 = sshll.u32 %s1041_s18, 4  ;;  %s901_s25 = int_to_ptr.vmem [resolvable:$false] %s900_s25 }
  0x59   : > { %s902_s27 = scalar_lea.vmem %s901_s25, 576  ;;  %p903_p7 = scmp.lt.s32.totalorder %s1230_s17, %s901_s25 }
  0x5a   : > { %p898_p13 = pnand %p896_p2, %p852_p5  ;;  %p904_p3 = scmp.lt.s32.totalorder %s902_s27, %s895_s0 }
  0x5c   : > { %p899_p0 = pneg %p898_p13  ;;  %p905_p6 = por %p904_p3, %p903_p7 }
  0x5e   : > { %p906_p9 = pnand %p905_p6, %p899_p0 }
  0x60   : > { %909 = shalt.err (!%p906_p9)
}
  0x61   : > { %712 = dma.hbm_to_vmem [thread:$0]  (!%p1165_p4), %s1226_s30, 288, %s1230_s17, %s169_s22, %s1039_s8, %s1039_s8, %s1040_s24  }
  0x62   : > { %194 = sbr.rel (%p1217_p8) target bundleno = 438 (0x1b6), region = 28  ;;  %s196_s23 = sand.u32 (!%p1217_p8), 1, %s1012_s13  }
  0x63   : > { %s687_s26 = smul.u32 (!%p1217_p8), 18, %s196_s23  ;;  %s197_s12 = scalar_lea.sflag (!%p1217_p8), [#allocation4], %s196_s23 }
  0x64   : > { %p1479_p7 = scmp.ne.s32.totalorder (!%p1217_p8), %s1470_s28, 0 }
  0x65   : > { %s1264_s21 = scalar_lea.vmem (!%p1217_p8), [#allocation3], %s687_s26 }
  0x69   : > { %983 = dma.done.wait (%p1479_p7), %s197_s12, 288  }
  0x6a   : > { %985 = vsyncadd (%p1479_p7), %s197_s12, 4294967008  ;;  %s206_s7 = scalar_lea.sflag [#allocation7], %s196_s23  ;;  %s1270_s20 = scalar_lea.vmem [#allocation6], %s687_s26 }
  0x6b   : > { %987 = dma.done.wait (%p1479_p7), %s206_s7, 288  }
  0x6c   : > { %989 = vsyncadd (%p1479_p7), %s206_s7, 4294967008  ;;  %v1277_v0 = vld [vmem:[%s1264_s21 + $0xa] sm:$0x3]  ;;  %v1280_v1 = vld [vmem:[%s1264_s21 + $0xc] sm:$0x3]  ;;  %v267_v4 = vlaneseq  ;;  %p283_p4 = scmp.eq.s32.totalorder %s1020_s15, 1 }
  0x6d   : > { %v1283_v2 = vld [vmem:[%s1264_s21 + $0xe] sm:$0x3]  ;;  %v1286_v3 = vld [vmem:[%s1264_s21 + $0x10] sm:$0x3]  ;;  %v407_v5 = vand.u32 2147483647, %v1277_v0 }
  0x6e   : > { %v408_v6 = vand.u32 2147483647, %v1280_v1  ;;  %v409_v7 = vand.u32 2147483647, %v1283_v2  ;;  %v410_v8 = vand.u32 2147483647, %v1286_v3 }
  0x6f   : > { %v411_v9 = vsub.f32 0.0, %v407_v5  ;;  %v268_v12 = vshrl.u32 %v267_v4, 7  ;;  %v249_v14 = vld [vmem:[%s1264_s21] sm:$0x3]  ;;  %v250_v15 = vld [vmem:[%s1264_s21 + $0x2] sm:$0x3] }
  0x70   : > { %v412_v10 = vsub.f32 0.0, %v408_v6  ;;  %v413_v11 = vsub.f32 0.0, %v409_v7  ;;  %v414_v13 = vsub.f32 0.0, %v410_v8  ;;  %v251_v20 = vld [vmem:[%s1264_s21 + $0x4] sm:$0x3]  ;;  %v1296_v22 = vand.u32 127, %v267_v4 }
  0x71   : > { %v415_v16 = vmul.f32 1.442695, %v411_v9  ;;  %v252_v21 = vld [vmem:[%s1264_s21 + $0x6] sm:$0x3]  ;;  %v272_v23 = vmul.u32 128, %v268_v12  ;;  %p286_p5 = scmp.eq.s32.totalorder %s1020_s15, 2 }
  0x72   : > { %v417_v17 = vmul.f32 1.442695, %v412_v10  ;;  %v419_v18 = vmul.f32 1.442695, %v413_v11  ;;  %v421_v19 = vmul.f32 1.442695, %v414_v13 }
  0x73   : > { %810 = vpow2.f32 %v415_v16  ;;  %v662_v24 = vmul.f32 -1.442695, %v249_v14  ;;  %v663_v25 = vmul.f32 -1.442695, %v250_v15  ;;  %v664_v26 = vmul.f32 -1.442695, %v251_v20 }
  0x74   : > { %812 = vpow2.f32 %v417_v17  ;;  %v665_v27 = vmul.f32 -1.442695, %v252_v21  ;;  %v1299_v28 = vadd.s32 %v272_v23, %v1296_v22  ;;  %v263_v41 = vld [vmem:[%s1270_s20 + $0xa] sm:$0x3]  ;;  %v264_v44 = vld [vmem:[%s1270_s20 + $0xc] sm:$0x3] }
  0x75   : > { %814 = vpow2.f32 %v419_v18  ;;  %v265_v48 = vld [vmem:[%s1270_s20 + $0xe] sm:$0x3]  ;;  %v266_v50 = vld [vmem:[%s1270_s20 + $0x10] sm:$0x3]  ;;  %v395_v51 = vmax.f32 %v1277_v0, 0.0  ;;  %v399_v52 = vmul.f32 %v263_v41, %v1277_v0  ;;  %v396_v54 = vmax.f32 %v1280_v1, 0.0 }
  0x76   : > { %816 = vpow2.f32 %v421_v19  ;;  %v276_v29 = vcvt.s32.f32 %v1299_v28  ;;  %s284_s17 = scalar_select %p283_p4, 6.0, 4.0  ;;  %v400_v55 = vmul.f32 %v264_v44, %v1280_v1  ;;  %v397_v56 = vmax.f32 %v1283_v2, 0.0  ;;  %v1324_v61 = vld [vmem:[%s1270_s20 + $0x8] sm:$0x3] }
  0x77   : > { %818 = vpow2.f32 %v662_v24  ;;  %v401_v57 = vmul.f32 %v265_v48, %v1283_v2  ;;  %v398_v59 = vmax.f32 %v1286_v3, 0.0  ;;  %v402_v60 = vmul.f32 %v266_v50, %v1286_v3  ;;  %v1331_v1 = vld [vmem:[%s1270_s20 + $0x4] sm:$0x3]  ;;  %s285_s28 = scalar_select %p283_p4, 7.0, 4.8 }
  0x78   : > { %820 = vpow2.f32 %v663_v25  ;;  %v277_v35 = vadd.f32 0.5, %v276_v29  ;;  %v403_v62 = vsub.f32 %v395_v51, %v399_v52  ;;  %s1500_s17 = smov (%p286_p5, %s284_s17), 9.0  ;;  %v404_v0 = vsub.f32 %v396_v54, %v400_v55  ;;  %v1336_v7 = vld [vmem:[%s1264_s21 + $0x8] sm:$0x3]  ;;  %v261_v28 = vld [vmem:[%s1270_s20 + $0x6] sm:$0x3] }
  0x79   : > { %822 = vpow2.f32 %v664_v26  ;;  %v405_v4 = vsub.f32 %v397_v56, %v401_v57  ;;  %vm327_vm0 = vcmp.eq.f32.partialorder %v1324_v61, 1.0  ;;  %v406_v8 = vsub.f32 %v398_v59, %v402_v60  ;;  %s1502_s28 = smov (%p286_p5, %s285_s28), 10.0  ;;  %v258_v41 = vld [vmem:[%s1270_s20] sm:$0x3]  ;;  %s1462_s8 = sand.u32 1, %s1000_s10  }
  0x7a   : > { %824 = vpow2.f32 %v665_v27  ;;  %v1307_v45 = vmul.f32 0.0625, %v277_v35  ;;  %vm370_vm1 = vcmask 1041408   ;;  %v321_v13 = vstv %s1500_s17  ;;  %s1379_s24 = sshll.u32 %s1462_s8, 3  ;;  %p235_p8 = scmp.eq.s32.totalorder %s1020_s15, 0 }
  0x7b   : > { %v334_v17 = vmul.f32 0.5, %v1331_v1  ;;  %v466_v18 = vand.u32 2147483647, %v1336_v7  ;;  %v337_v48 = vmul.f32 0.5, %v261_v28  ;;  %s1042_s29 = smov 0.0   ;;  %s234_s17 = scalar_lea.vmem [#allocation8], %s1379_s24 }
  0x7c   : > { %v280_v58 = vfloor.f32 %v1307_v45  ;;  %700 = sst [smem:[#allocation2]] (%p235_p8), %s1042_s29  ;;  %vm504_vm2 = vcmp.eq.s32.totalorder (%p286_p5), %v1296_v22, 0  ;;  %vm508_vm3 = vcmp.eq.s32.totalorder (%p286_p5), %v1296_v22, 1  ;;  %vm513_vm4 = vcmp.eq.s32.totalorder (%p286_p5), %v1296_v22, 2 }
  0x7d   : > { %v811_v30 = vpop.eup %810  ;;  %v335_v54 = vsub.f32 %v258_v41, %v334_v17  ;;  %v336_v60 = vadd.f32 %v334_v17, %v258_v41  ;;  %701 = sst [smem:[#allocation2 + $0x1]] (%p235_p8), %s1042_s29  ;;  %s484_s30 = sld [smem:[#allocation2]]  ;;  %vm518_vm5 = vcmp.eq.s32.totalorder (%p286_p5), %v1296_v22, 3 }
  0x7e   : > { %v813_v31 = vpop.eup %812  ;;  %v423_v32 = vadd.f32 1.0, %v811_v30  ;;  %v281_v6 = vmul.f32 16.0, %v280_v58  ;;  %702 = sst [smem:[#allocation2 + $0x2]] (%p235_p8), %s1042_s29  ;;  %s668_s22 = sld [smem:[#allocation2 + $0x1]] }
  0x7f   : > { %v815_v33 = vpop.eup %814  ;;  %v424_v34 = vadd.f32 1.0, %v813_v31  ;;  %703 = sst [smem:[#allocation2 + $0x3]] (%p235_p8), %s1042_s29  ;;  %s669_s0 = sld [smem:[#allocation2 + $0x2]] }
  0x80   : > { %v817_v36 = vpop.eup %816  ;;  %v425_v37 = vadd.f32 1.0, %v815_v33  ;;  %826 = vlog2.f32 %v423_v32  ;;  %v282_v23 = vsub.f32 %v276_v29, %v281_v6  ;;  %s670_s27 = sld [smem:[#allocation2 + $0x3]] }
  0x81   : > { %v819_v38 = vpop.eup %818  ;;  %v426_v39 = vadd.f32 1.0, %v817_v36  ;;  %828 = vlog2.f32 %v424_v34 }
  0x82   : > { %v821_v40 = vpop.eup %820  ;;  %830 = vlog2.f32 %v425_v37  ;;  %v292_v42 = vadd.f32 1.0, %v819_v38 }
  0x83   : > { %v823_v43 = vpop.eup %822  ;;  %832 = vlog2.f32 %v426_v39  ;;  %v298_v46 = vadd.f32 1.0, %v821_v40  ;;  %v467_v39 = vsub.f32 0.0, %v466_v18 }
  0x84   : > { %v825_v47 = vpop.eup %824  ;;  %834 = vrcp.f32 %v292_v42  ;;  %v304_v49 = vadd.f32 1.0, %v823_v43 }
  0x85   : > { %836 = vrcp.f32 %v298_v46  ;;  %v310_v53 = vadd.f32 1.0, %v825_v47  ;;  %v325_v47 = vstv %s1502_s28  ;;  %v468_v55 = vmul.f32 1.442695, %v467_v39 }
  0x86   : > { %838 = vrcp.f32 %v304_v49  ;;  %v259_v49 = vld [vmem:[%s1270_s20 + $0x2] sm:$0x3] }
  0x87   : > { %840 = vrcp.f32 %v310_v53 }
  0x88   : > { %842 = vpow2.f32 %v468_v55 }
  0x8a   : > { %v827_v63 = vpop.eup %826 }
  0x8b   : > { %v829_v2 = vpop.eup %828  ;;  %v428_v5 = vmul.f32 0.6931472, %v827_v63 }
  0x8c   : > { %v831_v3 = vpop.eup %830  ;;  %v430_v9 = vmul.f32 0.6931472, %v829_v2 }
  0x8d   : > { %v833_v10 = vpop.eup %832  ;;  %v432_v11 = vmul.f32 0.6931472, %v831_v3  ;;  %v435_v12 = vadd.f32 %v428_v5, %v403_v62  ;;  %v338_v62 = vsub.f32 %v259_v49, %v337_v48 }
  0x8e   : > { %v835_v14 = vpop.eup %834  ;;  %v434_v15 = vmul.f32 0.6931472, %v833_v10  ;;  %v436_v16 = vadd.f32 %v430_v9, %v404_v0  ;;  %v350_v10 = vmul.f32 %v261_v28, %v1331_v1 }
  0x8f   : > { %v837_v19 = vpop.eup %836  ;;  %v437_v20 = vadd.f32 %v432_v11, %v405_v4  ;;  %v441_v21 = vsel %vm327_vm0, %v435_v12, 0.0  ;;  %v313_v24 = vmul.f32 2.0, %v835_v14  ;;  %v339_v4 = vadd.f32 %v337_v48, %v259_v49 }
  0x90   : > { %v839_v25 = vpop.eup %838  ;;  %v438_v26 = vadd.f32 %v434_v15, %v406_v8  ;;  %v442_v27 = vsel %vm327_vm0, %v436_v16, 0.0  ;;  %v445_v30 = vsel %vm370_vm1, %v441_v21, 0.0  ;;  %v316_v31 = vmul.f32 2.0, %v837_v19 }
  0x91   : > { %v841_v32 = vpop.eup %840  ;;  %v443_v33 = vsel %vm327_vm0, %v437_v20, 0.0  ;;  %v446_v34 = vsel %vm370_vm1, %v442_v27, 0.0  ;;  %v666_v29 = vadd.f32 -0.5, %v313_v24  ;;  %v319_v35 = vmul.f32 2.0, %v839_v25 }
  0x92   : > { %v444_v36 = vsel %vm327_vm0, %v438_v26, 0.0  ;;  %v447_v37 = vadd.f32 %v446_v34, %v445_v30  ;;  %v448_v38 = vsel %vm370_vm1, %v443_v33, 0.0  ;;  %v667_v42 = vadd.f32 -0.5, %v316_v31  ;;  %v843_v26 = vpop.eup %842 }
  0x93   : > { %v450_v40 = vsel %vm370_vm1, %v444_v36, 0.0  ;;  %v320_v43 = vmul.f32 %v319_v35, %v319_v35  ;;  %v323_v44 = vmul.f32 2.0, %v841_v32  ;;  %v315_v50 = vadd.f32 %v666_v29, %v282_v23 }
  0x94   : > { %v449_v46 = vadd.f32 %v448_v38, %v447_v37  ;;  %v318_v56 = vadd.f32 %v667_v42, %v280_v58  ;;  %v470_v1 = vadd.f32 1.0, %v843_v26  ;;  %v463_v38 = vmax.f32 %v1336_v7, 0.0 }
  0x95   : > { %v322_v51 = vmul.f32 %v321_v13, %v320_v43  ;;  %v324_v52 = vmul.f32 %v323_v44, %v323_v44  ;;  %v381_v44 = vsel %vm370_vm1, %v1324_v61, 0.0 }
  0x96   : > { %v451_v53 = vadd.f32 %v450_v40, %v449_v46 }
  0x97   : > { %v326_v57 = vmul.f32 %v325_v47, %v324_v52  ;;  %v328_v59 = vmul.f32 0.5, %v322_v51 }
  0x98   : > { %452 = vadd.xlane.f32.xlu1 %v451_v53 }
  0x99   : > { %v329_v63 = vsub.f32 %v315_v50, %v328_v59  ;;  %v330_v0 = vadd.f32 %v328_v59, %v315_v50  ;;  %v331_v2 = vmul.f32 0.5, %v326_v57  ;;  %v349_v9 = vmul.f32 %v326_v57, %v322_v51 }
  0x9b   : > { %v332_v5 = vsub.f32 %v318_v56, %v331_v2  ;;  %v333_v6 = vadd.f32 %v331_v2, %v318_v56  ;;  %v340_v3 = vmin.f32 %v330_v0, %v336_v60  ;;  %v341_v8 = vmax.f32 %v329_v63, %v335_v54 }
  0x9c   : > { %v355_v11 = vmax.f32 %v330_v0, %v336_v60  ;;  %v356_v45 = vmin.f32 %v329_v63, %v335_v54  ;;  %v351_v23 = vadd.f32 %v350_v10, %v349_v9 }
  0x9d   : > { %v342_v58 = vsub.f32 %v340_v3, %v341_v8  ;;  %v344_v12 = vmin.f32 %v333_v6, %v339_v4  ;;  %v345_v13 = vmax.f32 %v332_v5, %v338_v62  ;;  %v359_v14 = vmax.f32 %v333_v6, %v339_v4 }
  0x9e   : > { %v357_v15 = vsub.f32 %v355_v11, %v356_v45  ;;  %v360_v16 = vmin.f32 %v332_v5, %v338_v62 }
  0x9f   : > { %v343_v17 = vmax.f32 %v342_v58, 0.0  ;;  %v346_v18 = vsub.f32 %v344_v12, %v345_v13 }
  0xa0   : > { %v358_v19 = vmax.f32 %v357_v15, 0.0  ;;  %v361_v20 = vsub.f32 %v359_v14, %v360_v16 }
  0xa1   : > { %v347_v21 = vmax.f32 %v346_v18, 0.0 }
  0xa2   : > { %v362_v24 = vmax.f32 %v361_v20, 0.0 }
  0xa3   : > { %v348_v25 = vmul.f32 %v347_v21, %v343_v17 }
  0xa4   : > { %v363_v27 = vmul.f32 %v362_v24, %v358_v19 }
  0xa5   : > { %v352_v30 = vsub.f32 %v351_v23, %v348_v25 }
  0xa6   : > { %844 = vrcp.f32 %v363_v27 }
  0xa7   : > { %846 = vrcp.f32 %v352_v30  ;;  %v364_v31 = vsub.f32 %v363_v27, %v352_v30 }
  0xa8   : > { %848 = vlog2.f32 %v470_v1 }
  0xb0   : > { %v845_v32 = vpop.eup %844 }
  0xb1   : > { %v847_v33 = vpop.eup %846  ;;  %v366_v34 = vmul.f32 %v845_v32, %v364_v31 }
  0xb2   : > { %v354_v28 = vmul.f32 %v847_v33, %v348_v25  ;;  %v849_v35 = vpop.eup %848 }
  0xb3   : > { %v472_v43 = vmul.f32 0.6931472, %v849_v35 }
  0xb4   : > { %v367_v29 = vsub.f32 %v354_v28, %v366_v34 }
  0xb6   : > { %v368_v36 = vsub.f32 1.0, %v367_v29  ;;  %v461_v37 = vmax.f32 %v367_v29, 0.0 }
  0xb8   : > { %v369_v39 = vsel %vm327_vm0, %v368_v36, 0.0  ;;  %v462_v40 = vsel %vm327_vm0, %v461_v37, 0.0 }
  0xb9   : > { %v371_v41 = vsel %vm370_vm1, %v369_v39, 0.0  ;;  %v464_v42 = vmul.f32 %v462_v40, %v1336_v7 }
  0xba   : > { %372 = vadd.xlane.f32.xlu0 %v371_v41 }
  0xbb   : > { %v465_v46 = vsub.f32 %v463_v38, %v464_v42 }
  0xbd   : > { %v473_v47 = vadd.f32 %v472_v43, %v465_v46 }
  0xbe   : > { %382 = vadd.xlane.f32.xlu0 %v381_v44 }
  0xbf   : > { %v474_v48 = vsel %vm370_vm1, %v473_v47, 0.0 }
  0xc0   : > { %475 = vadd.xlane.f32.xlu1 %v474_v48 }
 0x125   : > { %v453_v7 = vpop.xlane.xlu1 %452 }
 0x126   : > { %v454_v49 = vrot.slane %v453_v7, 4 }
 0x128   : > { %v455_v50 = vadd.f32 %v454_v49, %v453_v7 }
 0x12a   : > { %v456_v53 = vrot.slane %v455_v50, 2 }
 0x12c   : > { %v457_v63 = vadd.f32 %v456_v53, %v455_v50 }
 0x12e   : > { %v458_v8 = vrot.slane %v457_v63, 1 }
 0x130   : > { %v459_v58 = vadd.f32 %v458_v8, %v457_v63 }
 0x147   : > { %v373_v61 = vpop.xlane.xlu0 %372 }
 0x148   : > { %v374_v51 = vrot.slane %v373_v61, 4 }
 0x14a   : > { %v375_v52 = vadd.f32 %v374_v51, %v373_v61 }
 0x14b   : > { %v383_v54 = vpop.xlane.xlu0 %382 }
 0x14c   : > { %v376_v55 = vrot.slane %v375_v52, 2  ;;  %v384_v56 = vrot.slane %v383_v54, 4 }
 0x14d   : > { %v476_v57 = vpop.xlane.xlu1 %475 }
 0x14e   : > { %v385_v59 = vadd.f32 %v384_v56, %v383_v54  ;;  %v477_v60 = vrot.slane %v476_v57, 4  ;;  %v377_v62 = vadd.f32 %v376_v55, %v375_v52 }
 0x150   : > { %v386_v0 = vrot.slane %v385_v59, 2  ;;  %v478_v2 = vadd.f32 %v477_v60, %v476_v57  ;;  %v378_v4 = vrot.slane %v377_v62, 1 }
 0x152   : > { %v387_v5 = vadd.f32 %v386_v0, %v385_v59  ;;  %v479_v6 = vrot.slane %v478_v2, 2  ;;  %v379_v3 = vadd.f32 %v378_v4, %v377_v62 }
 0x154   : > { %v480_v9 = vadd.f32 %v479_v6, %v478_v2  ;;  %688 = vpush %v379_v3  ;;  %v388_v10 = vrot.slane %v387_v5, 1 }
 0x156   : > { %v389_v11 = vadd.f32 %v388_v10, %v387_v5  ;;  %v481_v45 = vrot.slane %v480_v9, 1 }
 0x158   : > { %690 = vpush %v389_v11  ;;  %v482_v12 = vadd.f32 %v481_v45, %v480_v9 }
 0x159   : > { %692 = vpush %v459_v58 }
 0x15a   : > { %694 = vpush %v482_v12 }
 0x185   : > { %s689_s18 = spop %688 }
 0x186   : > { %s485_s25 = sadd.f32 %s689_s18, %s484_s30 }
 0x188   : > { %487 = sst [smem:[#allocation2]] %s485_s25 }
 0x189   : > { %s691_s23 = spop %690  ;;  %s505_s28 = sld [smem:[#allocation2]] (%p286_p5) }
 0x18a   : > { %s489_s26 = sadd.f32 %s691_s23, %s668_s22  ;;  %s693_s12 = spop %692 }
 0x18b   : > { %s493_s21 = sadd.f32 %s693_s12, %s669_s0  ;;  %s695_s7 = spop %694 }
 0x18c   : > { %491 = sst [smem:[#allocation2 + $0x1]] %s489_s26  ;;  %503 = sbr.rel (!%p286_p5) target bundleno = 412 (0x19c), region = 44 }
 0x18d   : > { %495 = sst [smem:[#allocation2 + $0x2]] %s493_s21  ;;  %s672_s29 = sld [smem:[#allocation2 + $0x1]] (%p286_p5) }
 0x18e   : > { %s497_s20 = sadd.f32 %s695_s7, %s670_s27  ;;  %s673_s8 = sld [smem:[#allocation2 + $0x2]] (%p286_p5) }
 0x18f   : > { %v506_v13 = vstv (%p286_p5), %s505_s28 }
 0x190   : > { %499 = sst [smem:[#allocation2 + $0x3]] %s497_s20  ;;  %v507_v15 = vsel (%p286_p5), %vm504_vm2, %v506_v13, 0.0 }
 0x191   : > { %s674_s1 = sld [smem:[#allocation2 + $0x3]] (%p286_p5) }
 0x193   : > { %v510_v14 = vstv %s672_s29 }
 0x194   : > { %v511_v16 = vsel %vm508_vm3, %v510_v14, 0.0  ;;  %v515_v17 = vstv %s673_s8 }
 0x195   : > { %v512_v19 = vadd.f32 %v511_v16, %v507_v15  ;;  %v516_v20 = vsel %vm513_vm4, %v515_v17, 0.0 }
 0x197   : > { %v520_v18 = vstv %s674_s1  ;;  %v517_v23 = vadd.f32 %v516_v20, %v512_v19 }
 0x198   : > { %v521_v21 = vsel %vm518_vm5, %v520_v18, 0.0 }
 0x199   : > { %v522_v24 = vadd.f32 %v521_v21, %v517_v23 }
 0x19b   : > { %523 = vst [vmem:[%s234_s17] sm:$0xff] %v522_v24 }
 0x19c PF: > { %s676_s15 = sshll.u32 %s1024_s16, 7  ;;  %s538_s0 = sshll.u32 %s234_s17, 4  ;;  %s539_s0 = int_to_ptr.vmem [resolvable:$true] %s538_s0 }
 0x19d   : > { %s1393_s22 = scalar_lea.hbm %s1453_s2, %s676_s15  ;;  %s1480_s8 = sand.u32 1, %s1000_s10  }
 0x19e   : > { %s525_s1 = scalar_lea.sflag [#allocation5], %s1480_s8  ;;  %s910_s18 = scalar_lea.vmem %s539_s0, 128 }
 0x19f   : > { %p911_p1 = scmp.ne.s32.totalorder %s539_s0, %s910_s18  ;;  %p1481_p10 = scmp.ne.s32.totalorder %s1471_s3, 0 }
 0x1a0   : > { %s1043_s25 = smov [#allocation8]  }
 0x1a1   : > { %p912_p11 = pnand %p911_p1, %p1481_p10  ;;  %s914_s27 = sshll.u32 %s1043_s25, 4  ;;  %s915_s27 = int_to_ptr.vmem [resolvable:$false] %s914_s27 }
 0x1a2   : > { %s916_s23 = scalar_lea.vmem %s915_s27, 256  ;;  %p917_p2 = scmp.lt.s32.totalorder %s539_s0, %s915_s27 }
 0x1a3   : > { %p913_p12 = pneg %p912_p11  ;;  %p918_p13 = scmp.lt.s32.totalorder %s916_s23, %s910_s18 }
 0x1a5   : > { %p919_p0 = por %p918_p13, %p917_p2 }
 0x1a7   : > { %p920_p3 = pnand %p919_p0, %p913_p12 }
 0x1a9   : > { %923 = shalt.err (!%p920_p3)
}
 0x1aa   : > { %s924_s16 = scalar_lea.hbm %s1393_s22, 128  ;;  %s928_s21 = scalar_lea.hbm %s1453_s2, 256 }
 0x1ab   : > { %p925_p6 = scmp.ne.s32.totalorder %s1393_s22, %s924_s16  ;;  %p929_p4 = scmp.lt.u32.totalorder %s1393_s22, %s1453_s2 }
 0x1ac   : > { %p930_p5 = scmp.lt.u32.totalorder %s928_s21, %s924_s16  ;;  %p932_p1 = scmp.lt.u32.totalorder %s924_s16, %s1393_s22 }
 0x1ad   : > { %p926_p9 = pnand %p925_p6, %p1481_p10 }
 0x1ae   : > { %p931_p8 = por %p930_p5, %p929_p4 }
 0x1af   : > { %p927_p7 = pneg %p926_p9 }
 0x1b0   : > { %p933_p11 = por %p932_p1, %p931_p8 }
 0x1b2   : > { %p934_p12 = pnand %p933_p11, %p927_p7 }
 0x1b4   : > { %937 = shalt.err (!%p934_p12)
}
 0x1b5   : > { %704 = dma.vmem_to_hbm [thread:$0]  (%p1481_p10), %s539_s0, 128, %s1393_s22, %s525_s1  }
 0x1b6 PF: > { %p718_p2 = scmp.ge.s32.totalorder %s1036_s19, 2  ;;  %s550_s17 = sand.u32 1, %s996_s9  }
 0x1b7   : > { %p1482_p13 = scmp.ne.s32.totalorder %s1472_s6, 0  ;;  %s551_s28 = scalar_lea.sflag [#allocation5], %s550_s17 }
 0x1b9   : > { %p714_p0 = pnand %p718_p2, %p1482_p13 }
 0x1bb   : > { %991 = dma.done.wait (!%p714_p0), %s551_s28, 128  }
 0x1bc   : > { %993 = vsyncadd (!%p714_p0), %s551_s28, 4294967168  ;;  %s21_s19 = sadd.s32 1, %s1036_s19   ;;  %s1483_s15 = sld [smem:[#allocation12_spill]] }
 0x1bd   : > { %p18_p3 = scmp.ge.s32.totalorder %s21_s19, 8   ;;  %s1484_s16 = sld [smem:[#allocation13_spill]] }
 0x1be   : > { %s1485_s17 = sld [smem:[#allocation14_spill]]  ;;  %s1486_s18 = sld [smem:[#allocation15_spill]] }
 0x1bf   : > { %s1487_s9 = smov %s1000_s10  ;;  %s1488_s10 = smov %s1004_s11 }
 0x1c0   : > { %s1489_s11 = smov %s1146_s4  ;;  %s1490_s12 = smov %s1012_s13 }
 0x1c1   : > { %s1491_s13 = smov %s1016_s14  ;;  %s1492_s14 = smov %s1149_s5 }
 0x1c2   :  { %20 = sbr.rel (!%p18_p3) target bundleno = 14 (0xe), region = 102 }
 0x1c9   :  { %556 = vsyncpa [#allocation4], 1 }
 0x1ca   :  { %558 = vsyncpa [#allocation4 + $0x1], 1 }
 0x1cb   :  { %559 = vsyncpa [#allocation7], 1 }
 0x1cc   :  { %561 = vsyncpa [#allocation7 + $0x1], 1 }
 0x1cd   :  { %562 = vsyncpa [#allocation5], 1 }
 0x1ce   :  { %564 = vsyncpa [#allocation5 + $0x1], 1 }

</bundles_post_ra>
